<compile_context>
chip_gen: v7x
topology: tpu7x:2x2x1
jax: 0.10.0
libtpu: 0.0.40
codegen_flags: <defaults>
</compile_context>

<pallas_src>
import jax
import jax.numpy as jnp
from jax.experimental import pallas as pl
from jax.experimental.pallas import tpu as pltpu

_LANE = 128
_SUBLANE = 8


def _linear_kernel(z_ref, w_ref, b_ref, out_ref):
    # z: (tm, Z), w: (Z, tn) (pre-transposed W_mu), b: (1, tn) f32 -> out: (tm, tn)
    acc = jnp.dot(z_ref[...], w_ref[...], preferred_element_type=jnp.float32)
    out_ref[...] = (acc + b_ref[...]).astype(out_ref.dtype)


def _round_up(x, m):
    return ((x + m - 1) // m) * m


def _select_tiles(B, Z, H, in_bytes, out_bytes, vmem_budget=22 << 20):
    """Pick (tm, tn) for a full-K, weight-stationary tiling under a VMEM budget
    that already accounts for Pallas' default double buffering."""
    # Weight column panel: at most ~2/3 of the budget across its two buffers.
    w_budget_per_buf = (vmem_budget * 2 // 3) // 2
    if H <= _LANE:
        tn = H                                    # last block dim must be 128k or full
    else:
        tn = (w_budget_per_buf // (Z * in_bytes)) // _LANE * _LANE
        tn = max(_LANE, tn)
        if tn >= H:
            tn = H                                # whole weight resident
    used = 2 * Z * tn * in_bytes + 2 * tn * 4     # weight bufs + bias bufs (f32)
    rem = max(vmem_budget - used, 1 << 20)
    per_row = 2 * (Z * in_bytes + tn * out_bytes)  # double-buffered z + out rows
    tm = max(_SUBLANE, min(512, (rem // per_row) // _SUBLANE * _SUBLANE))
    # v7x megacore: keep >= 2 blocks along the (parallel) batch axis when possible.
    if tm >= B and B > _SUBLANE:
        tm = _round_up((B + 1) // 2, _SUBLANE)
    return tm, tn


def vib_forward(z, w_mu, b_mu, *, operand_dtype=None):
    """VIB forward: mu = z @ w_mu.T + b_mu (PyTorch nn.Linear semantics).

    z:    (B, z_dim)
    w_mu: (hidden, z_dim)  -- PyTorch Linear weight layout (NOT transposed)
    b_mu: (hidden,)
    operand_dtype: optional (e.g. jnp.bfloat16) dtype for the matmul operands;
        accumulation is always f32 and the output keeps z's original dtype.
    """
    B, Z = z.shape
    H = w_mu.shape[0]
    out_dtype = z.dtype

    # One-off, parameter-sized transforms in the wrapper (amortized per call).
    wT = jnp.transpose(w_mu)                      # (Z, H): kernel runs plain NN matmul
    if operand_dtype is not None:
        z = z.astype(operand_dtype)
        wT = wT.astype(operand_dtype)
    b2 = b_mu.reshape(1, H).astype(jnp.float32)   # bias kept f32 for the f32 add

    in_bytes = jnp.dtype(z.dtype).itemsize
    out_bytes = jnp.dtype(out_dtype).itemsize
    total_bytes = (B * Z + Z * H) * in_bytes + B * H * out_bytes + H * 4

    if total_bytes <= (2 << 20):
        # ---- Tiny path: single invocation, everything resident in VMEM. ----
        # Pad output lane dim to a multiple of 128 for lane-dense stores.
        Hp = _round_up(H, _LANE)
        if Hp != H:
            wT = jnp.pad(wT, ((0, 0), (0, Hp - H)))
            b2 = jnp.pad(b2, ((0, 0), (0, Hp - H)))
        out = pl.pallas_call(
            _linear_kernel,
            out_shape=jax.ShapeDtypeStruct((B, Hp), out_dtype),
            in_specs=[
                pl.BlockSpec(memory_space=pltpu.MemorySpace.VMEM),
                pl.BlockSpec(memory_space=pltpu.MemorySpace.VMEM),
                pl.BlockSpec(memory_space=pltpu.MemorySpace.VMEM),
            ],
            out_specs=pl.BlockSpec(memory_space=pltpu.MemorySpace.VMEM),
        )(z, wT, b2)
        return out[:, :H] if Hp != H else out

    # ---- Production path: weight-stationary, full-K tiles, cdiv grid. ----
    tm, tn = _select_tiles(B, Z, H, in_bytes, out_bytes)
    # Grid order (j, i): weight-panel axis outer, batch axis inner -> the
    # (Z, tn) weight block index is unchanged across the inner loop and is
    # DMA'd exactly once per column panel.
    grid = (pl.cdiv(H, tn), pl.cdiv(B, tm))
    return pl.pallas_call(
        _linear_kernel,
        out_shape=jax.ShapeDtypeStruct((B, H), out_dtype),
        grid=grid,
        in_specs=[
            pl.BlockSpec((tm, Z), lambda j, i: (i, 0)),    # z rows, full K
            pl.BlockSpec((Z, tn), lambda j, i: (0, j)),    # W^T panel, i-invariant
            pl.BlockSpec((1, tn), lambda j, i: (0, j)),    # bias panel
        ],
        out_specs=pl.BlockSpec((tm, tn), lambda j, i: (i, j)),
        compiler_params=pltpu.CompilerParams(
            dimension_semantics=("parallel", "parallel"),
            vmem_limit_bytes=32 << 20,                     # raise v5e's 16 MiB default
        ),
    )(z, wT, b2)


if __name__ == "__main__":
    # Small shapes implied by the module: batch=8, z_dim=32, hidden_dim=32.
    B, Z_DIM, HIDDEN = 8, 32, 32
    key = jax.random.PRNGKey(0)
    k_z, k_w, k_b = jax.random.split(key, 3)

    # Deterministic parameter init mimicking nn.Linear (uniform +/- 1/sqrt(in)).
    bound = 1.0 / (Z_DIM ** 0.5)
    w_mu = jax.random.uniform(k_w, (HIDDEN, Z_DIM), jnp.float32, -bound, bound)
    b_mu = jax.random.uniform(k_b, (HIDDEN,), jnp.float32, -bound, bound)
    z = jax.random.normal(k_z, (B, Z_DIM), jnp.float32)

    fwd = jax.jit(vib_forward, static_argnames=("operand_dtype",))

    mu = fwd(z, w_mu, b_mu)
    jax.block_until_ready(mu)
    ref = z @ w_mu.T + b_mu
    assert mu.shape == (B, HIDDEN)
    err = float(jnp.max(jnp.abs(mu - ref)))
    assert jnp.allclose(mu, ref, atol=5e-3, rtol=5e-3), err

    # Production-scale shapes: bf16 operands (f32 accumulation) on the tiled path.
    Bt, Zt, Ht = 1024, 512, 512
    kz2, kw2, kb2 = jax.random.split(jax.random.PRNGKey(1), 3)
    z2 = jax.random.normal(kz2, (Bt, Zt), jnp.float32)
    w2 = jax.random.normal(kw2, (Ht, Zt), jnp.float32) * 0.02
    b2 = jax.random.normal(kb2, (Ht,), jnp.float32) * 0.02
    mu2 = fwd(z2, w2, b2, operand_dtype=jnp.bfloat16)
    jax.block_until_ready(mu2)
    ref2 = z2 @ w2.T + b2
    err2 = float(jnp.max(jnp.abs(mu2 - ref2)))
    assert mu2.shape == (Bt, Ht)
    assert jnp.allclose(mu2, ref2, atol=3e-2, rtol=3e-2), err2

    # Ragged (non-tile-divisible) shapes stay on the pipelined path (cdiv grid).
    Br, Zr, Hr = 1000, 320, 384
    kz3, kw3, kb3 = jax.random.split(jax.random.PRNGKey(2), 3)
    z3 = jax.random.normal(kz3, (Br, Zr), jnp.float32)
    w3 = jax.random.normal(kw3, (Hr, Zr), jnp.float32) * 0.02
    b3 = jax.random.normal(kb3, (Hr,), jnp.float32) * 0.02
    mu3 = fwd(z3, w3, b3)
    jax.block_until_ready(mu3)
    ref3 = z3 @ w3.T + b3
    err3 = float(jnp.max(jnp.abs(mu3 - ref3)))
    assert mu3.shape == (Br, Hr)
    assert jnp.allclose(mu3, ref3, atol=2e-2, rtol=2e-2), err3

    print("KERNEL_OK")
</pallas_src>

<mosaic_0001>
module attributes {stable_mosaic.version = 11 : i64} {
  func.func @_linear_kernel(%arg0: memref<8x32xf32, #tpu.memory_space<vmem>>, %arg1: memref<32x128xf32, #tpu.memory_space<vmem>>, %arg2: memref<1x128xf32, #tpu.memory_space<vmem>>, %arg3: memref<8x128xf32, #tpu.memory_space<vmem>>) attributes {dimension_semantics = [], scalar_prefetch = 0 : i64, scratch_operands = 0 : i64, tpu.core_type = #tpu.core_type<tc>} {
    %c0 = arith.constant 0 : index
    %c0_0 = arith.constant 0 : index
    %0 = vector.load %arg0[%c0, %c0_0] : memref<8x32xf32, #tpu.memory_space<vmem>>, vector<8x32xf32>
    %c0_1 = arith.constant 0 : index
    %c0_2 = arith.constant 0 : index
    %1 = vector.load %arg1[%c0_1, %c0_2] : memref<32x128xf32, #tpu.memory_space<vmem>>, vector<32x128xf32>
    %cst = arith.constant dense<0.000000e+00> : vector<8x128xf32>
    %2 = tpu.matmul %0, %1, %cst {dimension_numbers = #tpu.dot_dimension_numbers<[1], [0], [0], [1], [0, 0, 1, 1], [], []>} : vector<8x32xf32>, vector<32x128xf32>, vector<8x128xf32> -> vector<8x128xf32>
    %c0_3 = arith.constant 0 : index
    %c0_4 = arith.constant 0 : index
    %3 = vector.load %arg2[%c0_3, %c0_4] : memref<1x128xf32, #tpu.memory_space<vmem>>, vector<1x128xf32>
    %4 = vector.broadcast %3 : vector<1x128xf32> to vector<8x128xf32>
    %5 = arith.addf %2, %4 : vector<8x128xf32>
    %c0_5 = arith.constant 0 : index
    %c0_6 = arith.constant 0 : index
    %6 = vector.load %arg3[%c0_5, %c0_6] : memref<8x128xf32, #tpu.memory_space<vmem>>, vector<8x128xf32>
    tpu.vector_store %arg3[%c0_5, %c0_6], %5 {strides = array<i32>} : memref<8x128xf32, #tpu.memory_space<vmem>>, vector<8x128xf32>,
    return
  }
}

</mosaic_0001>

<bundles_post_ra>
// kernel: vib_forward.1
= control target key start
LH: loop header
LB: loop body
LE: loop exit
PB: predicated region body
PF: predicated region fallthrough
CT: control target
= control target key end

     0   :  { %v168_v3 = vmov 0.0|0.0   ;;  %vm169_vm0 = vmmov 0   ;;  %v170_v6 = vmov 0.0   ;;  %s222_s0 = inlined_call_operand.vmem [shape: f32[8,32], index: 0, kind: input, shape index: {}]   ;;  %s223_s1 = inlined_call_operand.vmem [shape: f32[32,128], index: 1, kind: input, shape index: {}]   ;;  %s224_s2 = inlined_call_operand.vmem [shape: f32[1,128], index: 2, kind: input, shape index: {}]   ;;  %s225_s3 = inlined_call_operand.hbm [shape: f32[8,128], index: 3, kind: output, shape index: {}]  }
   0x1   :  { %v16_v0 = vld [vmem:[%s223_s1] sm:$0xff]  ;;  %v17_v1 = vld [vmem:[%s223_s1 + $0x8] sm:$0xff]  ;;  %v18_v2 = vld [vmem:[%s223_s1 + $0x10] sm:$0xff]  ;;  %134 = vmatprep.subr.bf16.mxu0 %v168_v3  ;;  %131 = vmatprep.mubr.msk.f32.mxu0 %vm169_vm0, %v170_v6 }
   0x2   :  { %v135_v4 = vpack.c.bf16 %v17_v1, %v16_v0  ;;  %v19_v5 = vld [vmem:[%s223_s1 + $0x18] sm:$0xff] }
   0x3   :  { %8 = vsyncpa [#allocation3], 0  ;;  %v138_v7 = vpack.c.bf16 %v19_v5, %v18_v2  ;;  %v15_v8 = vld [vmem:[%s222_s0] sm:$0xff]  ;;  %vm27_vm1 = vcmask 261120   ;;  %s171_s24 = smov [#allocation2]  }
   0x4   :  { %136 = vmatpush3.bf16.msra.mxu0 %v135_v4  ;;  %v116_v9 = vld [vmem:[%s224_s2] ss:$0 sm:$0xff]  ;;  %s108_s1 = sshll.u32 %s171_s24, 4  ;;  %s109_s1 = int_to_ptr.vmem [resolvable:$true] %s108_s1 }
   0x5   :  { %137 = vmatprep.subr.bf16.mxu0 %v168_v3  ;;  %s144_s25 = scalar_lea.vmem %s109_s1, 128  ;;  %p149_p1 = scmp.lt.s32.totalorder %s109_s1, %s109_s1 }
   0x6   :  { %p145_p0 = scmp.ne.s32.totalorder %s109_s1, %s144_s25  ;;  %p150_p2 = scmp.lt.s32.totalorder %s144_s25, %s144_s25 }
   0x8   :  { %139 = vmatpush3.bf16.msra.mxu0 %v138_v7  ;;  %p151_p3 = por %p150_p2, %p149_p1 }
   0xa   :  { %p152_p4 = pnand %p151_p3, %p145_p0 }
   0xb   :  { %132 = vmatmul.mubr.msk.f32.vlgmr.msra.gmra.mrb[0].mxu0 %vm27_vm1, %v15_v8 }
  0xde   :  { %v97_v10 = vpop.f32.mrb[0].mxu0 }
  0xdf   :  { %v98_v11 = vadd.f32 %v116_v9, %v97_v10  ;;  %v133_v12 = vpop.f32.mrb[1].mxu0 }
  0xe1   :  { %101 = vst [vmem:[#allocation2] sm:$0xff] %v98_v11 }
  0xe2   :  { %155 = shalt.err (!%p152_p4)
}
  0xe3   :  { %s156_s27 = scalar_lea.hbm %s225_s3, 128 }
  0xe4   :  { %p157_p5 = scmp.ne.s32.totalorder %s225_s3, %s156_s27  ;;  %p160_p6 = scmp.lt.u32.totalorder %s156_s27, %s225_s3 }
  0xe6   :  { %p162_p7 = pnand %p160_p6, %p157_p5 }
  0xe8   :  { %165 = shalt.err (!%p162_p7)
}
  0xe9   :  { %111 = dma.vmem_to_hbm [thread:$0]  %s109_s1, 128, %s225_s3, [#allocation3]  }
  0xea   :  { %166 = dma.done.wait [#allocation3], 128  }
  0xeb   :  { %167 = vsyncadd [#allocation3], 4294967168 }
  0xec   :  { %115 = vsyncpa [#allocation3], 1 }

</bundles_post_ra>
